<compile_context>
chip_gen: v5e
topology: v5e:2x2
jax: 0.10.0
libtpu: 0.0.40
codegen_flags: <defaults>
</compile_context>

<pallas_src>
import jax
import jax.numpy as jnp
from jax.experimental import pallas as pl
from jax.experimental.pallas import tpu as pltpu


def _round_up(x: int, m: int) -> int:
    return ((x + m - 1) // m) * m


def _lane_pad(d: int) -> int:
    # 256-wide tiles fill the v6e/v7x 2x256x256 MXU; for toy dims stick to 128
    # to limit padding waste (and 128 is optimal on v5e anyway).
    return _round_up(d, 256 if d > 256 else 128)


def prepare_params(w1, b1, w2, b2, compute_dtype=jnp.bfloat16):
    """One-time parameter prep (call at init, NOT per forward step).

    Pads the lane (feature) dims to MXU-friendly widths and casts the matmul
    weights to the compute dtype (bf16 by default).  Biases stay f32 and are
    added to the f32 accumulator.

    w1: [In, H]   b1: [H] or [1, H]
    w2: [H, Out]  b2: [Out] or [1, Out]
    """
    In, H = w1.shape
    H2, Out = w2.shape
    assert H2 == H
    H_p, Out_p = _lane_pad(H), _lane_pad(Out)

    b1 = jnp.reshape(b1, (1, H))
    b2 = jnp.reshape(b2, (1, Out))
    w1_p = jnp.pad(w1, ((0, 0), (0, H_p - H))).astype(compute_dtype)
    b1_p = jnp.pad(b1, ((0, 0), (0, H_p - H))).astype(jnp.float32)
    w2_p = jnp.pad(w2, ((0, H_p - H), (0, Out_p - Out))).astype(compute_dtype)
    b2_p = jnp.pad(b2, ((0, 0), (0, Out_p - Out))).astype(jnp.float32)
    return dict(w1=w1_p, b1=b1_p, w2=w2_p, b2=b2_p, out_features=Out)


def cognitive_core_kernel(x_ref, w1_ref, b1_ref, w2_ref, b2_ref, o_ref):
    # fc1: x @ W1 + b1, ReLU.  Cast operands to the weight dtype (bf16) in
    # registers; the MXU accumulates in f32.
    x = x_ref[...].astype(w1_ref.dtype)
    h = jnp.dot(x, w1_ref[...], preferred_element_type=jnp.float32)
    h = jnp.maximum(h + b1_ref[...], 0.0)
    # fc2: h @ W2 + b2 (h rounded to bf16 before the second matmul; ~1e-2 rel
    # error vs. the pure-f32 reference, documented/tested below).
    y = jnp.dot(h.astype(w2_ref.dtype), w2_ref[...],
                preferred_element_type=jnp.float32)
    o_ref[...] = (y + b2_ref[...]).astype(o_ref.dtype)


def _vmem_capacity_bytes() -> int:
    try:
        return int(pltpu.get_tpu_info().vmem_capacity_bytes)
    except Exception:
        return 64 * 1024 * 1024  # conservative (v7x per-TensorCore)


def _pick_tile_b(B, In, H_p, Out_p, x_isz, w_isz, o_isz, budget):
    # Resident params (single-buffered weights + f32 biases).
    fixed = w_isz * (In * H_p + H_p * Out_p) + 4 * (H_p + Out_p)
    # Per batch-row VMEM: double-buffered x/out tiles + in-kernel temporaries
    # (f32 h, bf16 copy of h, f32 y).
    per_row = (2 * In * x_isz + 2 * Out_p * o_isz
               + H_p * 4 + H_p * w_isz + Out_p * 4)
    avail = budget - fixed
    # TODO(synk): if the resident weights alone blow the VMEM budget (very
    # large H/Out, esp. on v7x's 64 MiB), add grid axes over Out ("parallel")
    # / H ("arbitrary" + f32 accumulator) instead of keeping them resident.
    if avail <= per_row * 8:
        max_rows = 8
    else:
        max_rows = (avail // per_row) // 8 * 8
    target = min(512, max_rows)
    # Guarantee >= 2 batch blocks when B permits so both v7x TensorCores work.
    min_blocks = 2 if B >= 16 else 1
    n_blocks = max(pl.cdiv(B, target), min_blocks)
    # Nearly-full last tile: tile sized from cdiv, not a fixed 512.
    tile_b = _round_up(pl.cdiv(B, n_blocks), 8)
    return max(8, min(tile_b, max_rows))


def cognitive_core(x, params):
    """Fused MLP forward: ReLU(x @ W1 + b1) @ W2 + b2.

    x: [B, In]; params from prepare_params().  Returns [B, out_features] in
    x.dtype.
    """
    w1, b1, w2, b2 = params["w1"], params["b1"], params["w2"], params["b2"]
    Out = params["out_features"]
    B, In = x.shape
    H_p = w1.shape[1]
    Out_p = w2.shape[1]
    out_dtype = x.dtype

    x_isz = jnp.dtype(x.dtype).itemsize
    w_isz = jnp.dtype(w1.dtype).itemsize
    o_isz = jnp.dtype(out_dtype).itemsize

    cap = _vmem_capacity_bytes()
    budget = int(cap * 0.75)
    tile_b = _pick_tile_b(B, In, H_p, Out_p, x_isz, w_isz, o_isz, budget)

    B_p = _round_up(B, tile_b)
    if B_p != B:
        # Minimal batch padding (< tile_b junk rows; outputs sliced off below).
        x = jnp.pad(x, ((0, B_p - B), (0, 0)))
    grid = (B_p // tile_b,)

    cost = pl.CostEstimate(
        flops=2 * B_p * (In * H_p + H_p * Out_p),
        transcendentals=0,
        bytes_accessed=(x_isz * B_p * In
                        + w_isz * (In * H_p + H_p * Out_p)
                        + 4 * (H_p + Out_p)
                        + o_isz * B_p * Out_p),
    )

    def run(single_buffer_weights: bool):
        if single_buffer_weights:
            def resident(shape):
                return pl.BlockSpec(shape, lambda i: (0, 0),
                                    pipeline_mode=pl.Buffered(1))
            weight_bufs = 1
        else:
            def resident(shape):
                return pl.BlockSpec(shape, lambda i: (0, 0))
            weight_bufs = 2

        need = (weight_bufs * (w_isz * (In * H_p + H_p * Out_p)
                               + 4 * (H_p + Out_p))
                + 2 * tile_b * In * x_isz + 2 * tile_b * Out_p * o_isz
                + tile_b * H_p * (4 + w_isz) + tile_b * Out_p * 4)
        # Never clamp below the footprint; leave headroom, cap at physical.
        vmem_limit = int(min(need + (4 << 20), cap))

        return pl.pallas_call(
            cognitive_core_kernel,
            out_shape=jax.ShapeDtypeStruct((B_p, Out_p), out_dtype),
            grid_spec=pltpu.PrefetchScalarGridSpec(
                num_scalar_prefetch=0,
                grid=grid,
                in_specs=[
                    pl.BlockSpec((tile_b, In), lambda i: (i, 0)),  # x (streamed)
                    resident((In, H_p)),       # W1 (VMEM-resident)
                    resident((1, H_p)),        # b1
                    resident((H_p, Out_p)),    # W2
                    resident((1, Out_p)),      # b2
                ],
                out_specs=pl.BlockSpec((tile_b, Out_p), lambda i: (i, 0)),
            ),
            compiler_params=pltpu.CompilerParams(
                dimension_semantics=("parallel",),
                vmem_limit_bytes=vmem_limit,
            ),
            cost_estimate=cost,
        )(x, w1, b1, w2, b2)

    try:
        out_p = run(single_buffer_weights=True)
    except Exception:
        # Fallback for JAX versions without pipeline_mode support on BlockSpec.
        out_p = run(single_buffer_weights=False)

    if B_p != B or Out_p != Out:
        out_p = out_p[:B, :Out]
    return out_p


if __name__ == "__main__":
    # Small shapes consistent with the module: Linear(in, hidden) -> Linear(hidden, out)
    B, INPUT, HIDDEN, OUTPUT = 8, 32, 64, 16

    key = jax.random.PRNGKey(0)
    k_x, k_w1, k_b1, k_w2, k_b2 = jax.random.split(key, 5)

    # Deterministic parameter init (uniform, PyTorch-Linear-style bounds).
    bound1 = 1.0 / (INPUT ** 0.5)
    bound2 = 1.0 / (HIDDEN ** 0.5)
    x = jax.random.normal(k_x, (B, INPUT), dtype=jnp.float32)
    w1 = jax.random.uniform(k_w1, (INPUT, HIDDEN), jnp.float32, -bound1, bound1)
    b1 = jax.random.uniform(k_b1, (HIDDEN,), jnp.float32, -bound1, bound1)
    w2 = jax.random.uniform(k_w2, (HIDDEN, OUTPUT), jnp.float32, -bound2, bound2)
    b2 = jax.random.uniform(k_b2, (OUTPUT,), jnp.float32, -bound2, bound2)

    params = prepare_params(w1, b1, w2, b2)   # one-time: pad + bf16 cast
    out = cognitive_core(x, params)
    out = jax.block_until_ready(out)

    ref = jnp.maximum(x @ w1 + b1, 0.0) @ w2 + b2
    assert out.shape == (B, OUTPUT)
    assert out.dtype == x.dtype
    # bf16 MXU operands with f32 accumulation: ~1e-2 relative error budget.
    assert jnp.allclose(out, ref, atol=3e-2, rtol=3e-2), \
        float(jnp.max(jnp.abs(out - ref)))

    print("KERNEL_OK")
</pallas_src>

<mosaic_0001>
module attributes {stable_mosaic.version = 11 : i64} {
  func.func @cognitive_core_kernel(%arg0: i32, %arg1: memref<8x32xf32, #tpu.memory_space<vmem>>, %arg2: memref<32x128xbf16, #tpu.memory_space<vmem>>, %arg3: memref<1x128xf32, #tpu.memory_space<vmem>>, %arg4: memref<128x128xbf16, #tpu.memory_space<vmem>>, %arg5: memref<1x128xf32, #tpu.memory_space<vmem>>, %arg6: memref<8x128xf32, #tpu.memory_space<vmem>>) attributes {dimension_semantics = [#tpu.dimension_semantics<parallel>], iteration_bounds = array<i64: 1>, scalar_prefetch = 0 : i64, scratch_operands = 0 : i64, tpu.core_type = #tpu.core_type<tc>, window_params = [{transform_indices = @transform_0, window_bounds = array<i64: 8, 32>}, {pipeline_mode = #tpu.pipeline_mode<synchronous>, transform_indices = @transform_1, window_bounds = array<i64: 32, 128>}, {pipeline_mode = #tpu.pipeline_mode<synchronous>, transform_indices = @transform_2, window_bounds = array<i64: 1, 128>}, {pipeline_mode = #tpu.pipeline_mode<synchronous>, transform_indices = @transform_3, window_bounds = array<i64: 128, 128>}, {pipeline_mode = #tpu.pipeline_mode<synchronous>, transform_indices = @transform_4, window_bounds = array<i64: 1, 128>}, {transform_indices = @transform_5, window_bounds = array<i64: 8, 128>}]} {
    %c0 = arith.constant 0 : index
    %c0_0 = arith.constant 0 : index
    %0 = vector.load %arg1[%c0, %c0_0] : memref<8x32xf32, #tpu.memory_space<vmem>>, vector<8x32xf32>
    %1 = arith.truncf %0 : vector<8x32xf32> to vector<8x32xbf16>
    %c0_1 = arith.constant 0 : index
    %c0_2 = arith.constant 0 : index
    %2 = vector.load %arg2[%c0_1, %c0_2] : memref<32x128xbf16, #tpu.memory_space<vmem>>, vector<32x128xbf16>
    %cst = arith.constant dense<0.000000e+00> : vector<8x128xf32>
    %3 = tpu.matmul %1, %2, %cst {dimension_numbers = #tpu.dot_dimension_numbers<[1], [0], [0], [1], [0, 0, 1, 1], [], []>} : vector<8x32xbf16>, vector<32x128xbf16>, vector<8x128xf32> -> vector<8x128xf32>
    %c0_3 = arith.constant 0 : index
    %c0_4 = arith.constant 0 : index
    %4 = vector.load %arg3[%c0_3, %c0_4] : memref<1x128xf32, #tpu.memory_space<vmem>>, vector<1x128xf32>
    %5 = vector.broadcast %4 : vector<1x128xf32> to vector<8x128xf32>
    %6 = arith.addf %3, %5 : vector<8x128xf32>
    %cst_5 = arith.constant 0.000000e+00 : f32
    %7 = vector.broadcast %cst_5 : f32 to vector<8x128xf32>
    %8 = arith.maximumf %6, %7 : vector<8x128xf32>
    %9 = arith.truncf %8 : vector<8x128xf32> to vector<8x128xbf16>
    %c0_6 = arith.constant 0 : index
    %c0_7 = arith.constant 0 : index
    %10 = vector.load %arg4[%c0_6, %c0_7] : memref<128x128xbf16, #tpu.memory_space<vmem>>, vector<128x128xbf16>
    %cst_8 = arith.constant dense<0.000000e+00> : vector<8x128xf32>
    %11 = tpu.matmul %9, %10, %cst_8 {dimension_numbers = #tpu.dot_dimension_numbers<[1], [0], [0], [1], [0, 0, 1, 1], [], []>} : vector<8x128xbf16>, vector<128x128xbf16>, vector<8x128xf32> -> vector<8x128xf32>
    %c0_9 = arith.constant 0 : index
    %c0_10 = arith.constant 0 : index
    %12 = vector.load %arg5[%c0_9, %c0_10] : memref<1x128xf32, #tpu.memory_space<vmem>>, vector<1x128xf32>
    %13 = vector.broadcast %12 : vector<1x128xf32> to vector<8x128xf32>
    %14 = arith.addf %11, %13 : vector<8x128xf32>
    %c0_11 = arith.constant 0 : index
    %c0_12 = arith.constant 0 : index
    %15 = vector.load %arg6[%c0_11, %c0_12] : memref<8x128xf32, #tpu.memory_space<vmem>>, vector<8x128xf32>
    tpu.vector_store %arg6[%c0_11, %c0_12], %14 {strides = array<i32>} : memref<8x128xf32, #tpu.memory_space<vmem>>, vector<8x128xf32>,
    return
  }
  func.func @transform_0(%arg0: i32) -> (i32, i32) {
    %c0_i32 = arith.constant 0 : i32
    %c0_i32_0 = arith.constant 0 : i32
    return %arg0, %c0_i32 : i32, i32
  }
  func.func @transform_1(%arg0: i32) -> (i32, i32) {
    %c0_i32 = arith.constant 0 : i32
    %c0_i32_0 = arith.constant 0 : i32
    %c0_i32_1 = arith.constant 0 : i32
    return %c0_i32, %c0_i32_0 : i32, i32
  }
  func.func @transform_2(%arg0: i32) -> (i32, i32) {
    %c0_i32 = arith.constant 0 : i32
    %c0_i32_0 = arith.constant 0 : i32
    %c0_i32_1 = arith.constant 0 : i32
    return %c0_i32, %c0_i32_0 : i32, i32
  }
  func.func @transform_3(%arg0: i32) -> (i32, i32) {
    %c0_i32 = arith.constant 0 : i32
    %c0_i32_0 = arith.constant 0 : i32
    %c0_i32_1 = arith.constant 0 : i32
    return %c0_i32, %c0_i32_0 : i32, i32
  }
  func.func @transform_4(%arg0: i32) -> (i32, i32) {
    %c0_i32 = arith.constant 0 : i32
    %c0_i32_0 = arith.constant 0 : i32
    %c0_i32_1 = arith.constant 0 : i32
    return %c0_i32, %c0_i32_0 : i32, i32
  }
  func.func @transform_5(%arg0: i32) -> (i32, i32) {
    %c0_i32 = arith.constant 0 : i32
    %c0_i32_0 = arith.constant 0 : i32
    return %arg0, %c0_i32 : i32, i32
  }
}

module attributes {stable_mosaic.version = 11 : i64} {
  func.func @cognitive_core_kernel(%arg0: i32, %arg1: memref<8x32xf32, #tpu.memory_space<vmem>>, %arg2: memref<32x128xbf16, #tpu.memory_space<vmem>>, %arg3: memref<1x128xf32, #tpu.memory_space<vmem>>, %arg4: memref<128x128xbf16, #tpu.memory_space<vmem>>, %arg5: memref<1x128xf32, #tpu.memory_space<vmem>>, %arg6: memref<8x128xf32, #tpu.memory_space<vmem>>) attributes {dimension_semantics = [#tpu.dimension_semantics<parallel>], iteration_bounds = array<i64: 1>, scalar_prefetch = 0 : i64, scratch_operands = 0 : i64, tpu.core_type = #tpu.core_type<tc>, window_params = [{transform_indices = @transform_0, window_bounds = array<i64: 8, 32>}, {pipeline_mode = #tpu.pipeline_mode<synchronous>, transform_indices = @transform_1, window_bounds = array<i64: 32, 128>}, {pipeline_mode = #tpu.pipeline_mode<synchronous>, transform_indices = @transform_2, window_bounds = array<i64: 1, 128>}, {pipeline_mode = #tpu.pipeline_mode<synchronous>, transform_indices = @transform_3, window_bounds = array<i64: 128, 128>}, {pipeline_mode = #tpu.pipeline_mode<synchronous>, transform_indices = @transform_4, window_bounds = array<i64: 1, 128>}, {transform_indices = @transform_5, window_bounds = array<i64: 8, 128>}]} {
    %c0 = arith.constant 0 : index
    %c0_0 = arith.constant 0 : index
    %0 = vector.load %arg1[%c0, %c0_0] : memref<8x32xf32, #tpu.memory_space<vmem>>, vector<8x32xf32>
    %1 = arith.truncf %0 : vector<8x32xf32> to vector<8x32xbf16>
    %c0_1 = arith.constant 0 : index
    %c0_2 = arith.constant 0 : index
    %2 = vector.load %arg2[%c0_1, %c0_2] : memref<32x128xbf16, #tpu.memory_space<vmem>>, vector<32x128xbf16>
    %cst = arith.constant dense<0.000000e+00> : vector<8x128xf32>
    %3 = tpu.matmul %1, %2, %cst {dimension_numbers = #tpu.dot_dimension_numbers<[1], [0], [0], [1], [0, 0, 1, 1], [], []>} : vector<8x32xbf16>, vector<32x128xbf16>, vector<8x128xf32> -> vector<8x128xf32>
    %c0_3 = arith.constant 0 : index
    %c0_4 = arith.constant 0 : index
    %4 = vector.load %arg3[%c0_3, %c0_4] : memref<1x128xf32, #tpu.memory_space<vmem>>, vector<1x128xf32>
    %5 = vector.broadcast %4 : vector<1x128xf32> to vector<8x128xf32>
    %6 = arith.addf %3, %5 : vector<8x128xf32>
    %cst_5 = arith.constant 0.000000e+00 : f32
    %7 = vector.broadcast %cst_5 : f32 to vector<8x128xf32>
    %8 = arith.maximumf %6, %7 : vector<8x128xf32>
    %9 = arith.truncf %8 : vector<8x128xf32> to vector<8x128xbf16>
    %c0_6 = arith.constant 0 : index
    %c0_7 = arith.constant 0 : index
    %10 = vector.load %arg4[%c0_6, %c0_7] : memref<128x128xbf16, #tpu.memory_space<vmem>>, vector<128x128xbf16>
    %cst_8 = arith.constant dense<0.000000e+00> : vector<8x128xf32>
    %11 = tpu.matmul %9, %10, %cst_8 {dimension_numbers = #tpu.dot_dimension_numbers<[1], [0], [0], [1], [0, 0, 1, 1], [], []>} : vector<8x128xbf16>, vector<128x128xbf16>, vector<8x128xf32> -> vector<8x128xf32>
    %c0_9 = arith.constant 0 : index
    %c0_10 = arith.constant 0 : index
    %12 = vector.load %arg5[%c0_9, %c0_10] : memref<1x128xf32, #tpu.memory_space<vmem>>, vector<1x128xf32>
    %13 = vector.broadcast %12 : vector<1x128xf32> to vector<8x128xf32>
    %14 = arith.addf %11, %13 : vector<8x128xf32>
    %c0_11 = arith.constant 0 : index
    %c0_12 = arith.constant 0 : index
    %15 = vector.load %arg6[%c0_11, %c0_12] : memref<8x128xf32, #tpu.memory_space<vmem>>, vector<8x128xf32>
    tpu.vector_store %arg6[%c0_11, %c0_12], %14 {strides = array<i32>} : memref<8x128xf32, #tpu.memory_space<vmem>>, vector<8x128xf32>,
    return
  }
  func.func @transform_0(%arg0: i32) -> (i32, i32) {
    %c0_i32 = arith.constant 0 : i32
    %c0_i32_0 = arith.constant 0 : i32
    return %arg0, %c0_i32 : i32, i32
  }
  func.func @transform_1(%arg0: i32) -> (i32, i32) {
    %c0_i32 = arith.constant 0 : i32
    %c0_i32_0 = arith.constant 0 : i32
    %c0_i32_1 = arith.constant 0 : i32
    return %c0_i32, %c0_i32_0 : i32, i32
  }
  func.func @transform_2(%arg0: i32) -> (i32, i32) {
    %c0_i32 = arith.constant 0 : i32
    %c0_i32_0 = arith.constant 0 : i32
    %c0_i32_1 = arith.constant 0 : i32
    return %c0_i32, %c0_i32_0 : i32, i32
  }
  func.func @transform_3(%arg0: i32) -> (i32, i32) {
    %c0_i32 = arith.constant 0 : i32
    %c0_i32_0 = arith.constant 0 : i32
    %c0_i32_1 = arith.constant 0 : i32
    return %c0_i32, %c0_i32_0 : i32, i32
  }
  func.func @transform_4(%arg0: i32) -> (i32, i32) {
    %c0_i32 = arith.constant 0 : i32
    %c0_i32_0 = arith.constant 0 : i32
    %c0_i32_1 = arith.constant 0 : i32
    return %c0_i32, %c0_i32_0 : i32, i32
  }
  func.func @transform_5(%arg0: i32) -> (i32, i32) {
    %c0_i32 = arith.constant 0 : i32
    %c0_i32_0 = arith.constant 0 : i32
    return %arg0, %c0_i32 : i32, i32
  }
}

</mosaic_0001>

<bundles_post_ra>
// kernel: tpu_custom_call.1
= control target key start
LH: loop header
LB: loop body
LE: loop exit
PB: predicated region body
PF: predicated region fallthrough
CT: control target
= control target key end

     0   :  { %10 = vsyncpa [#allocation3], 0  ;;  %s423_s0 = inlined_call_operand.hbm [shape: f32[8,32], index: 0, kind: input, shape index: {}]   ;;  %s424_s1 = inlined_call_operand.hbm [shape: bf16[32,128], index: 1, kind: input, shape index: {}]   ;;  %s425_s2 = inlined_call_operand.vmem [shape: f32[1,128], index: 2, kind: input, shape index: {}]   ;;  %s426_s3 = inlined_call_operand.hbm [shape: bf16[128,128], index: 3, kind: input, shape index: {}]   ;;  %s427_s4 = inlined_call_operand.vmem [shape: f32[1,128], index: 4, kind: input, shape index: {}]   ;;  %s428_s5 = inlined_call_operand.hbm [shape: f32[8,128], index: 5, kind: output, shape index: {}]  }
   0x1   :  { %11 = vsyncpa [#allocation6], 0  ;;  %s28_s20 = sshll.u32 %s424_s1, 4  ;;  %s29_s20 = int_to_ptr.hbm [resolvable:$true] %s28_s20 }
   0x2   :  { %12 = vsyncpa [#allocation4], 0  ;;  %s369_s21 = smov [#allocation5]   ;;  %s18_s25 = sshll.u32 %s423_s0, 4  ;;  %s19_s25 = int_to_ptr.hbm [resolvable:$true] %s18_s25 }
   0x3   :  { %s30_s22 = sshll.u32 %s369_s21, 4  ;;  %s370_s26 = smov 64   ;;  %s31_s22 = int_to_ptr.vmem [resolvable:$true] %s30_s22 }
   0x4   :  { %s371_s27 = smov 4   ;;  %s372_s28 = smov [#allocation2]  }
   0x5   :  { %36 = dma.hbm_to_vmem [thread:$0]  %s29_s20, 256, %s31_s22, [#allocation6], %s370_s26, %s370_s26, %s371_s27  }
   0x6   :  { %s20_s29 = sshll.u32 %s372_s28, 4  ;;  %s43_s7 = sshll.u32 %s426_s3, 4  ;;  %s21_s29 = int_to_ptr.vmem [resolvable:$true] %s20_s29  ;;  %s44_s7 = int_to_ptr.hbm [resolvable:$true] %s43_s7 }
   0x7   :  { %23 = dma.hbm_to_vmem [thread:$0]  %s19_s25, 128, %s21_s29, [#allocation3]  }
   0x8   :  { %s373_s1 = smov [#allocation7]  }
   0x9   :  { %s45_s8 = sshll.u32 %s373_s1, 4  ;;  %s46_s8 = int_to_ptr.vmem [resolvable:$true] %s45_s8 }
   0xa   :  { %51 = dma.hbm_to_vmem [thread:$0]  %s44_s7, 1024, %s46_s8, [#allocation6], %s370_s26, %s370_s26, %s371_s27  }
   0xb   :  { %363 = dma.done.wait [#allocation3], 128  }
   0xc   :  { %364 = vsyncadd [#allocation3], 4294967168 }
   0xd   :  { %365 = dma.done.wait [#allocation6], 1280  }
   0xe   :  { %366 = vsyncadd [#allocation6], 4294966016  ;;  %v250_v0 = vld [vmem:[#allocation5 + $0x8] sm:$0xff]  ;;  %v249_v2 = vld [vmem:[#allocation5] sm:$0xff]  ;;  %vm89_vm0 = vcmask 261120   ;;  %s374_s11 = smov [#allocation8]  }
   0xf   :  { %v258_v1 = vld [vmem:[#allocation7 + $0x38] sm:$0xff]  ;;  %99 = vmatpush.bf16.msra.mxu0 %v250_v0  ;;  %v67_v3 = vld [vmem:[#allocation2] sm:$0xff]  ;;  %v257_v4 = vld [vmem:[#allocation7 + $0x30] sm:$0xff]  ;;  %s195_s12 = sshll.u32 %s374_s11, 4  ;;  %s197_s15 = sshll.u32 %s428_s5, 4  ;;  %s196_s12 = int_to_ptr.vmem [resolvable:$true] %s195_s12  ;;  %s198_s15 = int_to_ptr.hbm [resolvable:$true] %s197_s15 }
  0x10   :  { %176 = vmatpush.bf16.msra.mxu1 %v258_v1  ;;  %v68_v5 = vpack.c.bf16 %v67_v3, %v67_v3  ;;  %v256_v6 = vld [vmem:[#allocation7 + $0x28] sm:$0xff]  ;;  %v255_v7 = vld [vmem:[#allocation7 + $0x20] sm:$0xff]  ;;  %v254_v8 = vld [vmem:[#allocation7 + $0x18] sm:$0xff] }
  0x11   :  { %v253_v9 = vld [vmem:[#allocation7 + $0x10] sm:$0xff]  ;;  %v252_v10 = vld [vmem:[#allocation7 + $0x8] sm:$0xff]  ;;  %v251_v11 = vld [vmem:[#allocation7] sm:$0xff] }
  0x12   :  { %v265_v12 = vld [vmem:[%s425_s2] ss:$0 sm:$0xff] }
  0x13   :  { %100 = vmatpush.bf16.msra.mxu0 %v249_v2  ;;  %v266_v18 = vld [vmem:[%s427_s4] ss:$0 sm:$0xff] }
  0x14   :  { %177 = vmatpush.bf16.msra.mxu1 %v257_v4 }
  0x16   :  { %216 = vmatmul.msk.bf16.vlgmr.msra.gmra.mxu0 %vm89_vm0, %v68_v5 }
  0x18   :  { %178 = vmatpush.bf16.msra.mxu1 %v256_v6 }
  0x1c   :  { %179 = vmatpush.bf16.msra.mxu1 %v255_v7 }
  0x20   :  { %180 = vmatpush.bf16.msra.mxu1 %v254_v8 }
  0x24   :  { %181 = vmatpush.bf16.msra.mxu1 %v253_v9 }
  0x28   :  { %182 = vmatpush.bf16.msra.mxu1 %v252_v10 }
  0x2c   :  { %183 = vmatpush.bf16.msra.mxu1 %v251_v11 }
  0x93   :  { %v102_v13 = vpop.f32.mrf.mxu0 }
  0x94   :  { %v103_v14 = vadd.f32 %v265_v12, %v102_v13 }
  0x96   :  { %v106_v15 = vmax.f32 %v103_v14, 0.0 }
  0x98   :  { %v107_v16 = vpack.c.bf16 %v106_v15, %v106_v15 }
  0x9a   :  { %184 = vmatmul.bf16.vlgmr.msra.gmra.mxu1 %v107_v16 }
  0x9b   :  { %v104_v17 = vpop.f32.mrf.mxu0 }
 0x117   :  { %v185_v19 = vpop.f32.mrf.mxu1 }
 0x118   :  { %v186_v20 = vadd.f32 %v266_v18, %v185_v19 }
 0x11a   :  { %189 = vst [vmem:[#allocation8] sm:$0xff] %v186_v20 }
 0x11b   :  { %200 = dma.vmem_to_hbm [thread:$0]  %s196_s12, 128, %s198_s15, [#allocation4]  }
 0x11f   :  { %v187_v21 = vpop.f32.mrf.mxu1 }
 0x120   :  { %367 = dma.done.wait [#allocation4], 128  }
 0x121   :  { %368 = vsyncadd [#allocation4], 4294967168 }
 0x122   :  { %205 = vsyncpa [#allocation3], 1 }
 0x123   :  { %206 = vsyncpa [#allocation6], 1 }
 0x124   :  { %207 = vsyncpa [#allocation4], 1 }

// kernel: tpu_custom_call.1
= control target key start
LH: loop header
LB: loop body
LE: loop exit
PB: predicated region body
PF: predicated region fallthrough
CT: control target
= control target key end

     0   :  { %10 = vsyncpa [#allocation3], 0  ;;  %s423_s0 = inlined_call_operand.hbm [shape: f32[8,32], index: 0, kind: input, shape index: {}]   ;;  %s424_s1 = inlined_call_operand.hbm [shape: bf16[32,128], index: 1, kind: input, shape index: {}]   ;;  %s425_s2 = inlined_call_operand.vmem [shape: f32[1,128], index: 2, kind: input, shape index: {}]   ;;  %s426_s3 = inlined_call_operand.hbm [shape: bf16[128,128], index: 3, kind: input, shape index: {}]   ;;  %s427_s4 = inlined_call_operand.vmem [shape: f32[1,128], index: 4, kind: input, shape index: {}]   ;;  %s428_s5 = inlined_call_operand.hbm [shape: f32[8,128], index: 5, kind: output, shape index: {}]  }
   0x1   :  { %11 = vsyncpa [#allocation6], 0  ;;  %s28_s20 = sshll.u32 %s424_s1, 4  ;;  %s29_s20 = int_to_ptr.hbm [resolvable:$true] %s28_s20 }
   0x2   :  { %12 = vsyncpa [#allocation4], 0  ;;  %s369_s21 = smov [#allocation5]   ;;  %s18_s25 = sshll.u32 %s423_s0, 4  ;;  %s19_s25 = int_to_ptr.hbm [resolvable:$true] %s18_s25 }
   0x3   :  { %s30_s22 = sshll.u32 %s369_s21, 4  ;;  %s370_s26 = smov 64   ;;  %s31_s22 = int_to_ptr.vmem [resolvable:$true] %s30_s22 }
   0x4   :  { %s371_s27 = smov 4   ;;  %s372_s28 = smov [#allocation2]  }
   0x5   :  { %36 = dma.hbm_to_vmem [thread:$0]  %s29_s20, 256, %s31_s22, [#allocation6], %s370_s26, %s370_s26, %s371_s27  }
   0x6   :  { %s20_s29 = sshll.u32 %s372_s28, 4  ;;  %s43_s7 = sshll.u32 %s426_s3, 4  ;;  %s21_s29 = int_to_ptr.vmem [resolvable:$true] %s20_s29  ;;  %s44_s7 = int_to_ptr.hbm [resolvable:$true] %s43_s7 }
   0x7   :  { %23 = dma.hbm_to_vmem [thread:$0]  %s19_s25, 128, %s21_s29, [#allocation3]  }
   0x8   :  { %s373_s1 = smov [#allocation7]  }
   0x9   :  { %s45_s8 = sshll.u32 %s373_s1, 4  ;;  %s46_s8 = int_to_ptr.vmem [resolvable:$true] %s45_s8 }
   0xa   :  { %51 = dma.hbm_to_vmem [thread:$0]  %s44_s7, 1024, %s46_s8, [#allocation6], %s370_s26, %s370_s26, %s371_s27  }
   0xb   :  { %363 = dma.done.wait [#allocation3], 128  }
   0xc   :  { %364 = vsyncadd [#allocation3], 4294967168 }
   0xd   :  { %365 = dma.done.wait [#allocation6], 1280  }
   0xe   :  { %366 = vsyncadd [#allocation6], 4294966016  ;;  %v250_v0 = vld [vmem:[#allocation5 + $0x8] sm:$0xff]  ;;  %v249_v2 = vld [vmem:[#allocation5] sm:$0xff]  ;;  %vm89_vm0 = vcmask 261120   ;;  %s374_s11 = smov [#allocation8]  }
   0xf   :  { %v258_v1 = vld [vmem:[#allocation7 + $0x38] sm:$0xff]  ;;  %99 = vmatpush.bf16.msra.mxu0 %v250_v0  ;;  %v67_v3 = vld [vmem:[#allocation2] sm:$0xff]  ;;  %v257_v4 = vld [vmem:[#allocation7 + $0x30] sm:$0xff]  ;;  %s195_s12 = sshll.u32 %s374_s11, 4  ;;  %s197_s15 = sshll.u32 %s428_s5, 4  ;;  %s196_s12 = int_to_ptr.vmem [resolvable:$true] %s195_s12  ;;  %s198_s15 = int_to_ptr.hbm [resolvable:$true] %s197_s15 }
  0x10   :  { %176 = vmatpush.bf16.msra.mxu1 %v258_v1  ;;  %v68_v5 = vpack.c.bf16 %v67_v3, %v67_v3  ;;  %v256_v6 = vld [vmem:[#allocation7 + $0x28] sm:$0xff]  ;;  %v255_v7 = vld [vmem:[#allocation7 + $0x20] sm:$0xff]  ;;  %v254_v8 = vld [vmem:[#allocation7 + $0x18] sm:$0xff] }
  0x11   :  { %v253_v9 = vld [vmem:[#allocation7 + $0x10] sm:$0xff]  ;;  %v252_v10 = vld [vmem:[#allocation7 + $0x8] sm:$0xff]  ;;  %v251_v11 = vld [vmem:[#allocation7] sm:$0xff] }
  0x12   :  { %v265_v12 = vld [vmem:[%s425_s2] ss:$0 sm:$0xff] }
  0x13   :  { %100 = vmatpush.bf16.msra.mxu0 %v249_v2  ;;  %v266_v18 = vld [vmem:[%s427_s4] ss:$0 sm:$0xff] }
  0x14   :  { %177 = vmatpush.bf16.msra.mxu1 %v257_v4 }
  0x16   :  { %216 = vmatmul.msk.bf16.vlgmr.msra.gmra.mxu0 %vm89_vm0, %v68_v5 }
  0x18   :  { %178 = vmatpush.bf16.msra.mxu1 %v256_v6 }
  0x1c   :  { %179 = vmatpush.bf16.msra.mxu1 %v255_v7 }
  0x20   :  { %180 = vmatpush.bf16.msra.mxu1 %v254_v8 }
  0x24   :  { %181 = vmatpush.bf16.msra.mxu1 %v253_v9 }
  0x28   :  { %182 = vmatpush.bf16.msra.mxu1 %v252_v10 }
  0x2c   :  { %183 = vmatpush.bf16.msra.mxu1 %v251_v11 }
  0x93   :  { %v102_v13 = vpop.f32.mrf.mxu0 }
  0x94   :  { %v103_v14 = vadd.f32 %v265_v12, %v102_v13 }
  0x96   :  { %v106_v15 = vmax.f32 %v103_v14, 0.0 }
  0x98   :  { %v107_v16 = vpack.c.bf16 %v106_v15, %v106_v15 }
  0x9a   :  { %184 = vmatmul.bf16.vlgmr.msra.gmra.mxu1 %v107_v16 }
  0x9b   :  { %v104_v17 = vpop.f32.mrf.mxu0 }
 0x117   :  { %v185_v19 = vpop.f32.mrf.mxu1 }
 0x118   :  { %v186_v20 = vadd.f32 %v266_v18, %v185_v19 }
 0x11a   :  { %189 = vst [vmem:[#allocation8] sm:$0xff] %v186_v20 }
 0x11b   :  { %200 = dma.vmem_to_hbm [thread:$0]  %s196_s12, 128, %s198_s15, [#allocation4]  }
 0x11f   :  { %v187_v21 = vpop.f32.mrf.mxu1 }
 0x120   :  { %367 = dma.done.wait [#allocation4], 128  }
 0x121   :  { %368 = vsyncadd [#allocation4], 4294967168 }
 0x122   :  { %205 = vsyncpa [#allocation3], 1 }
 0x123   :  { %206 = vsyncpa [#allocation6], 1 }
 0x124   :  { %207 = vsyncpa [#allocation4], 1 }

</bundles_post_ra>
